<compile_context>
chip_gen: v7x
topology: tpu7x:2x2x1
jax: 0.10.0
libtpu: 0.0.40
codegen_flags: <defaults>
</compile_context>

<pallas_src>
import jax
import jax.numpy as jnp
from jax.experimental import pallas as pl
from jax.experimental.pallas import tpu as pltpu

IN_DIM = 784       # 1 * 28 * 28
HID = 256
Z_DIM = 8          # config.model.z_dim for the synthetic config
OUT_PAD = 128      # lane-dense output width (mean head zero-padded)


def _round_up(n, m):
    return ((n + m - 1) // m) * m


def _cdiv(a, b):
    return -(-a // b)


def _bf16_tanh_supported():
    """bf16 EUP exists on v6e / v7x; fall back to f32 tanh elsewhere."""
    try:
        kind = jax.devices()[0].device_kind.lower()
    except Exception:
        return False
    return any(tag in kind for tag in ("v6", "6e", "v7", "7x"))


def _make_kernel(bf16_tanh):
    def kernel(x_ref, w1_ref, b1_ref, w2_ref, b2_ref, w3_ref, b3_ref, out_ref):
        # Cast the f32 input tile to bf16 in-kernel (avoids a wrapper-side
        # pad/cast pass over HBM).
        x = x_ref[...].astype(jnp.bfloat16)

        # Linear(784 -> 256) + Tanh  (bf16 MXU operands, f32 accumulation)
        h = jnp.dot(x, w1_ref[...],
                    preferred_element_type=jnp.float32) + b1_ref[...]
        if bf16_tanh:
            h = jnp.tanh(h.astype(jnp.bfloat16))          # bf16 EUP (v6e/v7x)
        else:
            h = jnp.tanh(h).astype(jnp.bfloat16)          # f32 EUP (v5e)

        # Linear(256 -> 256) + Tanh
        h = jnp.dot(h, w2_ref[...],
                    preferred_element_type=jnp.float32) + b2_ref[...]
        if bf16_tanh:
            h = jnp.tanh(h.astype(jnp.bfloat16))
        else:
            h = jnp.tanh(h).astype(jnp.bfloat16)

        # mean head: Linear(256 -> z_dim), zero-padded to 128 lanes
        mean = jnp.dot(h, w3_ref[...],
                       preferred_element_type=jnp.float32) + b3_ref[...]
        out_ref[...] = mean.astype(out_ref.dtype)

    return kernel


def _choose_bm(B):
    """Balanced batch tile: minimize last-tile waste, even #tiles for v7x."""
    max_bm = 512 if B >= 1024 else 256
    n_tiles = _cdiv(B, max_bm)
    if n_tiles > 1 and n_tiles % 2 == 1:
        n_tiles += 1                       # even split across 2 TensorCores
    return _round_up(_cdiv(B, n_tiles), 8)


def mlp_encoder(x_nchw, params):
    w1, b1, w2, b2, w3, b3 = params
    B = x_nchw.shape[0]
    # Row-major flatten, identical to torch .view(B, -1).  No pad, no cast:
    # the kernel reads the f32 rows directly.
    x = x_nchw.reshape(B, -1).astype(jnp.float32)
    assert x.shape[1] == IN_DIM

    BM = _choose_bm(B)
    grid_b = _cdiv(B, BM)
    out_rows = grid_b * BM                 # padded output rows (sliced off)

    # Small resident weights: bf16 MXU operands, f32 biases, mean head padded
    # with zero columns to a lane-dense 128-wide output.
    w1b = w1.astype(jnp.bfloat16)                                   # (784, 256)
    w2b = w2.astype(jnp.bfloat16)                                   # (256, 256)
    w3b = jnp.pad(w3, ((0, 0), (0, OUT_PAD - Z_DIM))).astype(jnp.bfloat16)
    b1f = b1.astype(jnp.float32)
    b2f = b2.astype(jnp.float32)
    b3f = jnp.pad(b3, ((0, 0), (0, OUT_PAD - Z_DIM))).astype(jnp.float32)

    kernel = _make_kernel(_bf16_tanh_supported())

    out = pl.pallas_call(
        kernel,
        out_shape=jax.ShapeDtypeStruct((out_rows, OUT_PAD), jnp.bfloat16),
        grid_spec=pltpu.PrefetchScalarGridSpec(
            num_scalar_prefetch=0,
            grid=(grid_b,),
            in_specs=[
                pl.BlockSpec((BM, IN_DIM), lambda i: (i, 0)),     # x tile (f32)
                pl.BlockSpec((IN_DIM, HID), lambda i: (0, 0)),    # W1 (resident)
                pl.BlockSpec((1, HID), lambda i: (0, 0)),         # b1
                pl.BlockSpec((HID, HID), lambda i: (0, 0)),       # W2 (resident)
                pl.BlockSpec((1, HID), lambda i: (0, 0)),         # b2
                pl.BlockSpec((HID, OUT_PAD), lambda i: (0, 0)),   # W3 (padded)
                pl.BlockSpec((1, OUT_PAD), lambda i: (0, 0)),     # b3 (padded)
            ],
            out_specs=pl.BlockSpec((BM, OUT_PAD), lambda i: (i, 0)),
        ),
        compiler_params=pltpu.CompilerParams(
            dimension_semantics=("parallel",)),
    )(x, w1b, b1f, w2b, b2f, w3b, b3f)

    # Garbage rows from the (possibly out-of-bounds) last tile and the padded
    # output columns are dropped here, before anything downstream sees them.
    return out[:B, :Z_DIM].astype(jnp.float32)


def init_params(key):
    # Deterministic synthetic init (uniform, matching torch.nn.Linear fan-in
    # scaling).  Weights stored as (in, out).
    k1, k2, k3, k4, k5, k6 = jax.random.split(key, 6)

    def unif(k, shape, fan_in):
        bound = 1.0 / jnp.sqrt(fan_in)
        return jax.random.uniform(k, shape, jnp.float32, -bound, bound)

    w1 = unif(k1, (IN_DIM, HID), IN_DIM)
    b1 = unif(k2, (1, HID), IN_DIM)
    w2 = unif(k3, (HID, HID), HID)
    b2 = unif(k4, (1, HID), HID)
    w3 = unif(k5, (HID, Z_DIM), HID)
    b3 = unif(k6, (1, Z_DIM), HID)
    return (w1, b1, w2, b2, w3, b3)


def reference(x_nchw, params):
    # Pure-JAX f32 reference of the PyTorch forward.
    w1, b1, w2, b2, w3, b3 = params
    x = x_nchw.reshape(x_nchw.shape[0], -1).astype(jnp.float32)
    h = jnp.tanh(x @ w1 + b1)
    h = jnp.tanh(h @ w2 + b2)
    return h @ w3 + b3


if __name__ == "__main__":
    key = jax.random.PRNGKey(0)
    kx, kx2, kp = jax.random.split(key, 3)
    params = init_params(kp)

    # MNIST-like input consistent with Linear(784, ...): (B, C, H, W) = (2, 1, 28, 28)
    x = jax.random.normal(kx, (2, 1, 28, 28), jnp.float32)
    out = jax.block_until_ready(mlp_encoder(x, params))
    ref = reference(x, params)
    assert out.shape == (2, Z_DIM)
    # bf16 MXU operands / bf16 output -> loosened tolerance vs f32 reference.
    assert jnp.allclose(out, ref, atol=3e-2, rtol=3e-2), "mismatch (B=2)"

    # Exercise the multi-tile, non-divisible-batch path (BM=136, 2 grid steps).
    x2 = jax.random.normal(kx2, (260, 1, 28, 28), jnp.float32)
    out2 = jax.block_until_ready(mlp_encoder(x2, params))
    ref2 = reference(x2, params)
    assert out2.shape == (260, Z_DIM)
    assert jnp.allclose(out2, ref2, atol=3e-2, rtol=3e-2), "mismatch (B=260)"

    print("KERNEL_OK")
</pallas_src>

<mosaic_0001>
module attributes {stable_mosaic.version = 11 : i64} {
  func.func @kernel(%arg0: i32, %arg1: memref<8x784xf32, #tpu.memory_space<vmem>>, %arg2: memref<784x256xbf16, #tpu.memory_space<vmem>>, %arg3: memref<1x256xf32, #tpu.memory_space<vmem>>, %arg4: memref<256x256xbf16, #tpu.memory_space<vmem>>, %arg5: memref<1x256xf32, #tpu.memory_space<vmem>>, %arg6: memref<256x128xbf16, #tpu.memory_space<vmem>>, %arg7: memref<1x128xf32, #tpu.memory_space<vmem>>, %arg8: memref<8x128xbf16, #tpu.memory_space<vmem>>) attributes {dimension_semantics = [#tpu.dimension_semantics<parallel>], iteration_bounds = array<i64: 1>, scalar_prefetch = 0 : i64, scratch_operands = 0 : i64, tpu.core_type = #tpu.core_type<tc>, window_params = [{transform_indices = @transform_0, window_bounds = array<i64: 8, 784>}, {pipeline_mode = #tpu.pipeline_mode<synchronous>, transform_indices = @transform_1, window_bounds = array<i64: 784, 256>}, {pipeline_mode = #tpu.pipeline_mode<synchronous>, transform_indices = @transform_2, window_bounds = array<i64: 1, 256>}, {pipeline_mode = #tpu.pipeline_mode<synchronous>, transform_indices = @transform_3, window_bounds = array<i64: 256, 256>}, {pipeline_mode = #tpu.pipeline_mode<synchronous>, transform_indices = @transform_4, window_bounds = array<i64: 1, 256>}, {pipeline_mode = #tpu.pipeline_mode<synchronous>, transform_indices = @transform_5, window_bounds = array<i64: 256, 128>}, {pipeline_mode = #tpu.pipeline_mode<synchronous>, transform_indices = @transform_6, window_bounds = array<i64: 1, 128>}, {transform_indices = @transform_7, window_bounds = array<i64: 8, 128>}]} {
    %c0 = arith.constant 0 : index
    %c0_0 = arith.constant 0 : index
    %0 = vector.load %arg1[%c0, %c0_0] : memref<8x784xf32, #tpu.memory_space<vmem>>, vector<8x784xf32>
    %1 = arith.truncf %0 : vector<8x784xf32> to vector<8x784xbf16>
    %c0_1 = arith.constant 0 : index
    %c0_2 = arith.constant 0 : index
    %2 = vector.load %arg2[%c0_1, %c0_2] : memref<784x256xbf16, #tpu.memory_space<vmem>>, vector<784x256xbf16>
    %cst = arith.constant dense<0.000000e+00> : vector<8x256xf32>
    %3 = tpu.matmul %1, %2, %cst {dimension_numbers = #tpu.dot_dimension_numbers<[1], [0], [0], [1], [0, 0, 1, 1], [], []>} : vector<8x784xbf16>, vector<784x256xbf16>, vector<8x256xf32> -> vector<8x256xf32>
    %c0_3 = arith.constant 0 : index
    %c0_4 = arith.constant 0 : index
    %4 = vector.load %arg3[%c0_3, %c0_4] : memref<1x256xf32, #tpu.memory_space<vmem>>, vector<1x256xf32>
    %5 = vector.broadcast %4 : vector<1x256xf32> to vector<8x256xf32>
    %6 = arith.addf %3, %5 : vector<8x256xf32>
    %7 = math.tanh %6 : vector<8x256xf32>
    %8 = arith.truncf %7 : vector<8x256xf32> to vector<8x256xbf16>
    %c0_5 = arith.constant 0 : index
    %c0_6 = arith.constant 0 : index
    %9 = vector.load %arg4[%c0_5, %c0_6] : memref<256x256xbf16, #tpu.memory_space<vmem>>, vector<256x256xbf16>
    %cst_7 = arith.constant dense<0.000000e+00> : vector<8x256xf32>
    %10 = tpu.matmul %8, %9, %cst_7 {dimension_numbers = #tpu.dot_dimension_numbers<[1], [0], [0], [1], [0, 0, 1, 1], [], []>} : vector<8x256xbf16>, vector<256x256xbf16>, vector<8x256xf32> -> vector<8x256xf32>
    %c0_8 = arith.constant 0 : index
    %c0_9 = arith.constant 0 : index
    %11 = vector.load %arg5[%c0_8, %c0_9] : memref<1x256xf32, #tpu.memory_space<vmem>>, vector<1x256xf32>
    %12 = vector.broadcast %11 : vector<1x256xf32> to vector<8x256xf32>
    %13 = arith.addf %10, %12 : vector<8x256xf32>
    %14 = math.tanh %13 : vector<8x256xf32>
    %15 = arith.truncf %14 : vector<8x256xf32> to vector<8x256xbf16>
    %c0_10 = arith.constant 0 : index
    %c0_11 = arith.constant 0 : index
    %16 = vector.load %arg6[%c0_10, %c0_11] : memref<256x128xbf16, #tpu.memory_space<vmem>>, vector<256x128xbf16>
    %cst_12 = arith.constant dense<0.000000e+00> : vector<8x128xf32>
    %17 = tpu.matmul %15, %16, %cst_12 {dimension_numbers = #tpu.dot_dimension_numbers<[1], [0], [0], [1], [0, 0, 1, 1], [], []>} : vector<8x256xbf16>, vector<256x128xbf16>, vector<8x128xf32> -> vector<8x128xf32>
    %c0_13 = arith.constant 0 : index
    %c0_14 = arith.constant 0 : index
    %18 = vector.load %arg7[%c0_13, %c0_14] : memref<1x128xf32, #tpu.memory_space<vmem>>, vector<1x128xf32>
    %19 = vector.broadcast %18 : vector<1x128xf32> to vector<8x128xf32>
    %20 = arith.addf %17, %19 : vector<8x128xf32>
    %21 = arith.truncf %20 : vector<8x128xf32> to vector<8x128xbf16>
    %c0_15 = arith.constant 0 : index
    %c0_16 = arith.constant 0 : index
    %22 = vector.load %arg8[%c0_15, %c0_16] : memref<8x128xbf16, #tpu.memory_space<vmem>>, vector<8x128xbf16>
    tpu.vector_store %arg8[%c0_15, %c0_16], %21 {strides = array<i32>} : memref<8x128xbf16, #tpu.memory_space<vmem>>, vector<8x128xbf16>,
    return
  }
  func.func @transform_0(%arg0: i32) -> (i32, i32) {
    %c0_i32 = arith.constant 0 : i32
    %c0_i32_0 = arith.constant 0 : i32
    return %arg0, %c0_i32 : i32, i32
  }
  func.func @transform_1(%arg0: i32) -> (i32, i32) {
    %c0_i32 = arith.constant 0 : i32
    %c0_i32_0 = arith.constant 0 : i32
    %c0_i32_1 = arith.constant 0 : i32
    return %c0_i32, %c0_i32_0 : i32, i32
  }
  func.func @transform_2(%arg0: i32) -> (i32, i32) {
    %c0_i32 = arith.constant 0 : i32
    %c0_i32_0 = arith.constant 0 : i32
    %c0_i32_1 = arith.constant 0 : i32
    return %c0_i32, %c0_i32_0 : i32, i32
  }
  func.func @transform_3(%arg0: i32) -> (i32, i32) {
    %c0_i32 = arith.constant 0 : i32
    %c0_i32_0 = arith.constant 0 : i32
    %c0_i32_1 = arith.constant 0 : i32
    return %c0_i32, %c0_i32_0 : i32, i32
  }
  func.func @transform_4(%arg0: i32) -> (i32, i32) {
    %c0_i32 = arith.constant 0 : i32
    %c0_i32_0 = arith.constant 0 : i32
    %c0_i32_1 = arith.constant 0 : i32
    return %c0_i32, %c0_i32_0 : i32, i32
  }
  func.func @transform_5(%arg0: i32) -> (i32, i32) {
    %c0_i32 = arith.constant 0 : i32
    %c0_i32_0 = arith.constant 0 : i32
    %c0_i32_1 = arith.constant 0 : i32
    return %c0_i32, %c0_i32_0 : i32, i32
  }
  func.func @transform_6(%arg0: i32) -> (i32, i32) {
    %c0_i32 = arith.constant 0 : i32
    %c0_i32_0 = arith.constant 0 : i32
    %c0_i32_1 = arith.constant 0 : i32
    return %c0_i32, %c0_i32_0 : i32, i32
  }
  func.func @transform_7(%arg0: i32) -> (i32, i32) {
    %c0_i32 = arith.constant 0 : i32
    %c0_i32_0 = arith.constant 0 : i32
    return %arg0, %c0_i32 : i32, i32
  }
}

</mosaic_0001>

<bundles_post_ra>
// kernel: tpu_custom_call.1
= control target key start
LH: loop header
LB: loop body
LE: loop exit
PB: predicated region body
PF: predicated region fallthrough
CT: control target
= control target key end

     0   :  { %12 = vsyncpa [#allocation3], 0  ;;  %s2109_s0 = inlined_call_operand.hbm [shape: f32[2,784], index: 0, kind: input, shape index: {}]   ;;  %s2110_s1 = inlined_call_operand.hbm [shape: bf16[784,256], index: 1, kind: input, shape index: {}]   ;;  %s2111_s2 = inlined_call_operand.vmem [shape: f32[1,256], index: 2, kind: input, shape index: {}]   ;;  %s2112_s3 = inlined_call_operand.hbm [shape: bf16[256,256], index: 3, kind: input, shape index: {}]   ;;  %s2113_s4 = inlined_call_operand.vmem [shape: f32[1,256], index: 4, kind: input, shape index: {}]   ;;  %s2114_s5 = inlined_call_operand.hbm [shape: bf16[256,128], index: 5, kind: input, shape index: {}]   ;;  %s2115_s6 = inlined_call_operand.vmem [shape: f32[1,128], index: 6, kind: input, shape index: {}]   ;;  %s2116_s7 = inlined_call_operand.hbm [shape: bf16[8,128], index: 7, kind: output, shape index: {}]  }
   0x1   :  { %13 = vsyncpa [#allocation6], 0 }
   0x2   :  { %14 = vsyncpa [#allocation9], 0 }
   0x3   :  { %15 = vsyncpa [#allocation4], 0 }
   0x4   :  { %20 = vsyncadd [#allocation3], 672  ;;  %s1943_s24 = smov [#allocation5]   ;;  %s1825_s28 = scalar_lea.hbm %s2110_s1, 12544 }
   0x5   :  { %s33_s25 = sshll.u32 %s1943_s24, 4  ;;  %p1826_p0 = scmp.ne.s32.totalorder %s2110_s1, %s1825_s28  ;;  %s34_s25 = int_to_ptr.vmem [resolvable:$true] %s33_s25 }
   0x6   :  { %p1829_p1 = scmp.lt.u32.totalorder %s1825_s28, %s2110_s1 }
   0x8   :  { %p1831_p2 = pnand %p1829_p1, %p1826_p0 }
   0xa   :  { %1834 = shalt.err (!%p1831_p2)
}
   0xb   :  { %s1835_s10 = scalar_lea.vmem %s34_s25, 12544  ;;  %p1840_p4 = scmp.lt.s32.totalorder %s34_s25, %s34_s25 }
   0xc   :  { %p1836_p3 = scmp.ne.s32.totalorder %s34_s25, %s1835_s10  ;;  %p1841_p5 = scmp.lt.s32.totalorder %s1835_s10, %s1835_s10 }
   0xe   :  { %p1842_p6 = por %p1841_p5, %p1840_p4 }
  0x10   :  { %p1843_p7 = pnand %p1842_p6, %p1836_p3 }
  0x12   :  { %1846 = shalt.err (!%p1843_p7)
}
  0x13   :  { %s1944_s11 = smov 128   ;;  %s1945_s12 = smov 8  }
  0x14   :  { %39 = dma.hbm_to_vmem [thread:$0]  %s2110_s1, 12544, %s34_s25, [#allocation6], %s1944_s11, %s1944_s11, %s1945_s12  }
  0x15   :  { %s1946_s15 = smov [#allocation2]   ;;  %s1847_s19 = scalar_lea.hbm %s2109_s0, 224 }
  0x16   :  { %s21_s16 = sshll.u32 %s1946_s15, 4  ;;  %p1848_p8 = scmp.ne.s32.totalorder %s2109_s0, %s1847_s19  ;;  %s22_s16 = int_to_ptr.vmem [resolvable:$true] %s21_s16 }
  0x17   :  { %p1851_p9 = scmp.lt.u32.totalorder %s1847_s19, %s2109_s0 }
  0x19   :  { %p1853_p10 = pnand %p1851_p9, %p1848_p8 }
  0x1b   :  { %1856 = shalt.err (!%p1853_p10)
}
  0x1c   :  { %s1857_s24 = scalar_lea.vmem %s22_s16, 224  ;;  %s1861_s1 = scalar_lea.vmem %s22_s16, 896 }
  0x1d   :  { %p1858_p11 = scmp.ne.s32.totalorder %s22_s16, %s1857_s24  ;;  %p1862_p12 = scmp.lt.s32.totalorder %s22_s16, %s22_s16 }
  0x1e   :  { %p1863_p13 = scmp.lt.s32.totalorder %s1861_s1, %s1857_s24 }
  0x20   :  { %p1864_p0 = por %p1863_p13, %p1862_p12 }
  0x22   :  { %p1865_p1 = pnand %p1864_p0, %p1858_p11 }
  0x24   :  { %1868 = shalt.err (!%p1865_p1)
}
  0x25   :  { %s1947_s25 = smov 224   ;;  %s1948_s26 = smov 14  }
  0x26   :  { %27 = dma.hbm_to_vmem [thread:$0]  %s2109_s0, 224, %s22_s16, [#allocation3], %s1947_s25, %s1947_s25, %s1948_s26  }
  0x27   :  { %s1949_s29 = smov [#allocation7]   ;;  %s1950_s8 = smov [#allocation8]  }
  0x28   :  { %s47_s30 = sshll.u32 %s1949_s29, 4  ;;  %s61_s9 = sshll.u32 %s1950_s8, 4  ;;  %s48_s30 = int_to_ptr.vmem [resolvable:$true] %s47_s30  ;;  %s2023_s9 = int_to_ptr.vmem [resolvable:$true] %s61_s9 }
  0x29   :  { %s1869_s14 = scalar_lea.hbm %s2112_s3, 4096 }
  0x2a   :  { %p1870_p2 = scmp.ne.s32.totalorder %s2112_s3, %s1869_s14  ;;  %p1873_p3 = scmp.lt.u32.totalorder %s1869_s14, %s2112_s3 }
  0x2c   :  { %p1875_p4 = pnand %p1873_p3, %p1870_p2 }
  0x2e   :  { %1878 = shalt.err (!%p1875_p4)
}
  0x2f   :  { %s1879_s0 = scalar_lea.vmem %s48_s30, 4096  ;;  %p1884_p6 = scmp.lt.s32.totalorder %s48_s30, %s48_s30 }
  0x30   :  { %p1880_p5 = scmp.ne.s32.totalorder %s48_s30, %s1879_s0  ;;  %p1885_p7 = scmp.lt.s32.totalorder %s1879_s0, %s1879_s0 }
  0x32   :  { %p1886_p8 = por %p1885_p7, %p1884_p6 }
  0x34   :  { %p1887_p9 = pnand %p1886_p8, %p1880_p5 }
  0x36   :  { %1890 = shalt.err (!%p1887_p9)
}
  0x37   :  { %53 = dma.hbm_to_vmem [thread:$0]  %s2112_s3, 4096, %s48_s30, [#allocation6], %s1944_s11, %s1944_s11, %s1945_s12  }
  0x38   :  { %s1891_s23 = scalar_lea.hbm %s2114_s5, 2048 }
  0x39   :  { %p1892_p10 = scmp.ne.s32.totalorder %s2114_s5, %s1891_s23  ;;  %p1895_p11 = scmp.lt.u32.totalorder %s1891_s23, %s2114_s5 }
  0x3b   :  { %p1897_p12 = pnand %p1895_p11, %p1892_p10 }
  0x3d   :  { %1900 = shalt.err (!%p1897_p12)
}
  0x3e   :  { %s1901_s27 = scalar_lea.vmem %s2023_s9, 2048  ;;  %p1906_p0 = scmp.lt.s32.totalorder %s2023_s9, %s2023_s9 }
  0x3f   :  { %p1902_p13 = scmp.ne.s32.totalorder %s2023_s9, %s1901_s27  ;;  %p1907_p1 = scmp.lt.s32.totalorder %s1901_s27, %s1901_s27 }
  0x41   :  { %p1908_p2 = por %p1907_p1, %p1906_p0 }
  0x43   :  { %p1909_p3 = pnand %p1908_p2, %p1902_p13 }
  0x45   :  { %1912 = shalt.err (!%p1909_p3)
}
  0x46   :  { %s1951_s3 = smov 64   ;;  %s1952_s11 = smov 4  }
  0x47   :  { %67 = dma.hbm_to_vmem [thread:$0]  %s2114_s5, 2048, %s2023_s9, [#allocation9], %s1951_s3, %s1951_s3, %s1952_s11  }
  0x48   :  { %1935 = dma.done.wait [#allocation3], 896  }
  0x49   :  { %1936 = vsyncadd [#allocation3], 4294966400 }
  0x4a   :  { %1937 = dma.done.wait [#allocation6], 16640  }
  0x4b   :  { %1938 = vsyncadd [#allocation6], 4294950656 }
  0x4c   :  { %1939 = dma.done.wait [#allocation9], 2048  }
  0x4d   :  { %1940 = vsyncadd [#allocation9], 4294965248  ;;  %v1594_v0 = vld [vmem:[#allocation5 + $0x104] ss:$8 sps:$4 sm:$0xff]   ;;  %v1596_v1 = vld [vmem:[#allocation5 + $0x100] ss:$8 sps:$4 sm:$0xff]   ;;  %v106_v11 = vlaneseq }
  0x4e   :  { %829 = vmatprep.subr.bf16.mxu0 %v1594_v0  ;;  %v1597_v2 = vld [vmem:[#allocation5 + $0x114] ss:$8 sps:$4 sm:$0xff]   ;;  %v1599_v3 = vld [vmem:[#allocation5 + $0x110] ss:$8 sps:$4 sm:$0xff]   ;;  %v1600_v4 = vld [vmem:[#allocation5 + $0x124] ss:$8 sps:$4 sm:$0xff]  }
  0x4f   :  { %830 = vmatpush1.bf16.msra.mxu0 %v1596_v1  ;;  %v1602_v5 = vld [vmem:[#allocation5 + $0x120] ss:$8 sps:$4 sm:$0xff]   ;;  %v1603_v6 = vld [vmem:[#allocation5 + $0x134] ss:$8 sps:$4 sm:$0xff]   ;;  %v1605_v7 = vld [vmem:[#allocation5 + $0x130] ss:$8 sps:$4 sm:$0xff]  }
  0x50   :  { %831 = vmatprep.subr.bf16.mxu0 %v1597_v2  ;;  %v1606_v8 = vld [vmem:[#allocation5 + $0x144] ss:$8 sps:$4 sm:$0xff]   ;;  %v1953_v9 = vmov 1983009808   ;;  %v1608_v12 = vld [vmem:[#allocation5 + $0x140] ss:$8 sps:$4 sm:$0xff]  }
  0x51   :  { %v104_v10 = vunpack.c.l.s4 %v1953_v9  ;;  %v1609_v13 = vld [vmem:[#allocation5 + $0x154] ss:$8 sps:$4 sm:$0xff]   ;;  %v2057_v15 = vshrl.u32 %v106_v11, 7  ;;  %v1611_v16 = vld [vmem:[#allocation5 + $0x150] ss:$8 sps:$4 sm:$0xff]   ;;  %vm784_vm0 = vcmask 130048  }
  0x52   :  { %v1612_v17 = vld [vmem:[#allocation5 + $0x164] ss:$8 sps:$4 sm:$0xff]   ;;  %v1614_v19 = vld [vmem:[#allocation5 + $0x160] ss:$8 sps:$4 sm:$0xff]   ;;  %v1615_v22 = vld [vmem:[#allocation5 + $0x174] ss:$8 sps:$4 sm:$0xff]  }
  0x53   :  { %832 = vmatpush1.bf16.msra.mxu0 %v1599_v3  ;;  %v105_v14 = vunpack.c.0.s8 %v104_v10  ;;  %v1642_v20 = vld [vmem:[#allocation2 + $0x4] ss:$14 sps:$4 sm:$0xff]   ;;  %v1644_v21 = vld [vmem:[#allocation2 + $0x20] ss:$14 sps:$4 sm:$0xff]  }
  0x54   :  { %833 = vmatprep.subr.bf16.mxu0 %v1600_v4  ;;  %v1652_v25 = vld [vmem:[#allocation5 + $0x4] ss:$8 sps:$4 sm:$0xff]   ;;  %v1617_v26 = vld [vmem:[#allocation5 + $0x170] ss:$8 sps:$4 sm:$0xff]   ;;  %v1657_v29 = vld [vmem:[#allocation5] ss:$8 sps:$4 sm:$0xff]  }
  0x55   :  { %v2060_v18 = vsub.s32 %v105_v14, %v2057_v15  ;;  %v1618_v28 = vld [vmem:[#allocation5 + $0x184] ss:$8 sps:$4 sm:$0xff]   ;;  %788 = vmatprep.subr.bf16.mxu1 %v1652_v25  ;;  %v1658_v31 = vld [vmem:[#allocation5 + $0x14] ss:$8 sps:$4 sm:$0xff]   ;;  %v1620_v32 = vld [vmem:[#allocation5 + $0x180] ss:$8 sps:$4 sm:$0xff]  }
  0x56   :  { %v1621_v33 = vld [vmem:[#allocation5 + $0x194] ss:$8 sps:$4 sm:$0xff]   ;;  %789 = vmatpush1.bf16.msra.mxu1 %v1657_v29  ;;  %v1663_v34 = vld [vmem:[#allocation5 + $0x10] ss:$8 sps:$4 sm:$0xff]   ;;  %v1664_v35 = vld [vmem:[#allocation5 + $0x24] ss:$8 sps:$4 sm:$0xff]  }
  0x57   :  { %834 = vmatpush1.bf16.msra.mxu0 %v1602_v5  ;;  %v2063_v23 = vrot.slane %v1642_v20, %v2060_v18  ;;  %v2066_v24 = vrot.slane %v1644_v21, %v2060_v18  ;;  %790 = vmatprep.subr.bf16.mxu1 %v1658_v31  ;;  %v1623_v36 = vld [vmem:[#allocation5 + $0x190] ss:$8 sps:$4 sm:$0xff]   ;;  %v1669_v37 = vld [vmem:[#allocation5 + $0x20] ss:$8 sps:$4 sm:$0xff]   ;;  %v1670_v38 = vld [vmem:[#allocation5 + $0x34] ss:$8 sps:$4 sm:$0xff]  }
  0x58   :  { %835 = vmatprep.subr.bf16.mxu0 %v1603_v6  ;;  %v1624_v39 = vld [vmem:[#allocation5 + $0x1a4] ss:$8 sps:$4 sm:$0xff]   ;;  %v1626_v40 = vld [vmem:[#allocation5 + $0x1a0] ss:$8 sps:$4 sm:$0xff]   ;;  %v1675_v41 = vld [vmem:[#allocation5 + $0x30] ss:$8 sps:$4 sm:$0xff]  }
  0x59   :  { %v134_v27 = vcombine.high %v2063_v23, %v2066_v24  ;;  %v1676_v42 = vld [vmem:[#allocation5 + $0x44] ss:$8 sps:$4 sm:$0xff]   ;;  %v1627_v43 = vld [vmem:[#allocation5 + $0x1b4] ss:$8 sps:$4 sm:$0xff]   ;;  %v1629_v44 = vld [vmem:[#allocation5 + $0x1b0] ss:$8 sps:$4 sm:$0xff]   ;;  %v133_v61 = vcombine.low %v2063_v23, %v2066_v24 }
  0x5a   :  { %791 = vmatpush1.bf16.msra.mxu1 %v1663_v34  ;;  %v1681_v45 = vld [vmem:[#allocation5 + $0x40] ss:$8 sps:$4 sm:$0xff]   ;;  %v1682_v46 = vld [vmem:[#allocation5 + $0x54] ss:$8 sps:$4 sm:$0xff]   ;;  %v1630_v47 = vld [vmem:[#allocation5 + $0x1c4] ss:$8 sps:$4 sm:$0xff]  }
  0x5b   :  { %836 = vmatpush1.bf16.msra.mxu0 %v1605_v7  ;;  %v180_v30 = vpack.c.bf16 %v134_v27, %v134_v27  ;;  %792 = vmatprep.subr.bf16.mxu1 %v1664_v35  ;;  %v1632_v48 = vld [vmem:[#allocation5 + $0x1c0] ss:$8 sps:$4 sm:$0xff]   ;;  %v1687_v49 = vld [vmem:[#allocation5 + $0x50] ss:$8 sps:$4 sm:$0xff]   ;;  %v1688_v50 = vld [vmem:[#allocation5 + $0x64] ss:$8 sps:$4 sm:$0xff]   ;;  %v179_v2 = vpack.c.bf16 %v133_v61, %v133_v61 }
  0x5c   :  { %837 = vmatprep.subr.bf16.mxu0 %v1606_v8  ;;  %v1633_v51 = vld [vmem:[#allocation5 + $0x1d4] ss:$8 sps:$4 sm:$0xff]   ;;  %v1635_v52 = vld [vmem:[#allocation5 + $0x1d0] ss:$8 sps:$4 sm:$0xff]   ;;  %v1693_v53 = vld [vmem:[#allocation5 + $0x60] ss:$8 sps:$4 sm:$0xff]  }
  0x5d   :  { %861 = vmatprep.mubr.bf16.mxu0 %v180_v30  ;;  %v1694_v54 = vld [vmem:[#allocation5 + $0x74] ss:$8 sps:$4 sm:$0xff]   ;;  %v1636_v55 = vld [vmem:[#allocation5 + $0x1e4] ss:$8 sps:$4 sm:$0xff]   ;;  %v1638_v56 = vld [vmem:[#allocation5 + $0x1e0] ss:$8 sps:$4 sm:$0xff]  }
  0x5e   :  { %793 = vmatpush1.bf16.msra.mxu1 %v1669_v37  ;;  %v1699_v57 = vld [vmem:[#allocation5 + $0x70] ss:$8 sps:$4 sm:$0xff]   ;;  %v1700_v58 = vld [vmem:[#allocation5 + $0x84] ss:$8 sps:$4 sm:$0xff]   ;;  %v1639_v59 = vld [vmem:[#allocation5 + $0x1f4] ss:$8 sps:$4 sm:$0xff]  }
  0x5f   :  { %838 = vmatpush1.bf16.msra.mxu0 %v1608_v12  ;;  %794 = vmatprep.subr.bf16.mxu1 %v1670_v38  ;;  %v1641_v60 = vld [vmem:[#allocation5 + $0x1f0] ss:$8 sps:$4 sm:$0xff]   ;;  %v1705_v62 = vld [vmem:[#allocation5 + $0x80] ss:$8 sps:$4 sm:$0xff]   ;;  %v1706_v63 = vld [vmem:[#allocation5 + $0x94] ss:$8 sps:$4 sm:$0xff]  }
  0x60   :  { %839 = vmatprep.subr.bf16.mxu0 %v1609_v13  ;;  %v1648_v0 = vld [vmem:[#allocation5 + $0x204] ss:$8 sps:$4 sm:$0xff]   ;;  %v1646_v1 = vld [vmem:[#allocation5 + $0x200] ss:$8 sps:$4 sm:$0xff]   ;;  %v1651_v3 = vld [vmem:[#allocation5 + $0x214] ss:$8 sps:$4 sm:$0xff]  }
  0x61   :  { %v1711_v4 = vld [vmem:[#allocation5 + $0x90] ss:$8 sps:$4 sm:$0xff]   ;;  %v1712_v5 = vld [vmem:[#allocation5 + $0xa4] ss:$8 sps:$4 sm:$0xff]   ;;  %v1717_v9 = vld [vmem:[#allocation5 + $0xa0] ss:$8 sps:$4 sm:$0xff]  }
  0x62   :  { %795 = vmatpush1.bf16.msra.mxu1 %v1675_v41  ;;  %v1736_v6 = vld [vmem:[#allocation2 + $0x8] ss:$14 sps:$4 sm:$0xff]   ;;  %v1739_v7 = vld [vmem:[#allocation2 + $0x24] ss:$14 sps:$4 sm:$0xff]  }
  0x63   :  { %840 = vmatpush1.bf16.msra.mxu0 %v1611_v16  ;;  %796 = vmatprep.subr.bf16.mxu1 %v1676_v42  ;;  %v1649_v8 = vld [vmem:[#allocation5 + $0x210] ss:$8 sps:$4 sm:$0xff]   ;;  %v2073_v10 = vrot.slane %v1736_v6, %v2060_v18  ;;  %v1718_v11 = vld [vmem:[#allocation5 + $0xb4] ss:$8 sps:$4 sm:$0xff]   ;;  %v2076_v12 = vrot.slane %v1739_v7, %v2060_v18  ;;  %v1656_v13 = vld [vmem:[#allocation5 + $0x224] ss:$8 sps:$4 sm:$0xff]  }
  0x64   :  { %841 = vmatprep.subr.bf16.mxu0 %v1612_v17  ;;  %v1723_v14 = vld [vmem:[#allocation5 + $0xb0] ss:$8 sps:$4 sm:$0xff]   ;;  %v1654_v20 = vld [vmem:[#allocation5 + $0x220] ss:$8 sps:$4 sm:$0xff]   ;;  %v1724_v21 = vld [vmem:[#allocation5 + $0xc4] ss:$8 sps:$4 sm:$0xff]  }
  0x65   :  { %v168_v16 = vcombine.high %v2073_v10, %v2076_v12  ;;  %v1751_v17 = vld [vmem:[#allocation2] ss:$14 sps:$4 sm:$0xff]   ;;  %v1668_v30 = vld [vmem:[#allocation5 + $0x244] ss:$8 sps:$4 sm:$0xff]  }
  0x66   :  { %797 = vmatpush1.bf16.msra.mxu1 %v1681_v45  ;;  %v1662_v23 = vld [vmem:[#allocation5 + $0x234] ss:$8 sps:$4 sm:$0xff]   ;;  %v109_v24 = vrot.slane %v1751_v17, %v2060_v18  ;;  %v1742_v34 = vld [vmem:[#allocation5 + $0xe4] ss:$8 sps:$4 sm:$0xff]   ;;  %v1672_v37 = vld [vmem:[#allocation5 + $0x250] ss:$8 sps:$4 sm:$0xff]   ;;  %v167_v17 = vcombine.low %v2073_v10, %v2076_v12 }
  0x67   :  { %842 = vmatpush1.bf16.msra.mxu0 %v1614_v19  ;;  %798 = vmatprep.subr.bf16.mxu1 %v1682_v46  ;;  %v1752_v19 = vld [vmem:[#allocation2 + $0x1c] ss:$14 sps:$4 sm:$0xff]  }
  0x68   :  { %843 = vmatprep.subr.bf16.mxu0 %v1615_v22  ;;  %v182_v22 = vpack.c.bf16 %v168_v16, %v168_v16  ;;  %v123_v25 = vrot.slane %v1752_v19, %v2060_v18  ;;  %v1730_v29 = vld [vmem:[#allocation5 + $0xd4] ss:$8 sps:$4 sm:$0xff]   ;;  %v1750_v41 = vld [vmem:[#allocation5 + $0xf0] ss:$8 sps:$4 sm:$0xff]  }
  0x69   :  { %v1674_v35 = vld [vmem:[#allocation5 + $0x254] ss:$8 sps:$4 sm:$0xff]   ;;  %v1753_v45 = vld [vmem:[#allocation7] ss:$8 sps:$4 sm:$0xff]  }
  0x6a   :  { %799 = vmatpush1.bf16.msra.mxu1 %v1687_v49  ;;  %v132_v27 = vcombine.high %v109_v24, %v123_v25  ;;  %v1748_v38 = vld [vmem:[#allocation5 + $0xf4] ss:$8 sps:$4 sm:$0xff]   ;;  %v131_v42 = vcombine.low %v109_v24, %v123_v25  ;;  %v1684_v46 = vld [vmem:[#allocation5 + $0x270] ss:$8 sps:$4 sm:$0xff]   ;;  %v1692_v49 = vld [vmem:[#allocation5 + $0x284] ss:$8 sps:$4 sm:$0xff]   ;;  %v181_v25 = vpack.c.bf16 %v167_v17, %v167_v17 }
  0x6b   :  { %844 = vmatpush1.bf16.msra.mxu0 %v1617_v26  ;;  %800 = vmatprep.subr.bf16.mxu1 %v1688_v50  ;;  %v1729_v26 = vld [vmem:[#allocation5 + $0xc0] ss:$8 sps:$4 sm:$0xff]   ;;  %v1710_v61 = vld [vmem:[#allocation5 + $0x2b4] ss:$8 sps:$4 sm:$0xff]   ;;  %v1771_v6 = vld [vmem:[#allocation7 + $0x60] ss:$8 sps:$4 sm:$0xff]  }
  0x6c   :  { %845 = vmatprep.subr.bf16.mxu0 %v1618_v28  ;;  %v1660_v28 = vld [vmem:[#allocation5 + $0x230] ss:$8 sps:$4 sm:$0xff]   ;;  %v178_v31 = vpack.c.bf16 %v132_v27, %v132_v27  ;;  %v1756_v50 = vld [vmem:[#allocation7 + $0x10] ss:$8 sps:$4 sm:$0xff]   ;;  %v1734_v16 = vld [vmem:[#allocation5 + $0x2f4] ss:$8 sps:$4 sm:$0xff]  }
  0x6d   :  { %v1720_v7 = vld [vmem:[#allocation5 + $0x2d0] ss:$8 sps:$4 sm:$0xff]   ;;  %v1744_v27 = vld [vmem:[#allocation5 + $0x300] ss:$8 sps:$4 sm:$0xff]  }
  0x6e   :  { %801 = vmatpush1.bf16.msra.mxu1 %v1693_v53  ;;  %820 = vmatprep.mubr.bf16.mxu1 %v178_v31  ;;  %v1698_v53 = vld [vmem:[#allocation5 + $0x294] ss:$8 sps:$4 sm:$0xff]   ;;  %v1777_v19 = vld [vmem:[#allocation7 + $0x80] ss:$8 sps:$4 sm:$0xff]   ;;  %v988_v17 = vld [vmem:[%s2113_s4] sm:$0x3] }
  0x6f   :  { %846 = vmatpush1.bf16.msra.mxu0 %v1620_v32  ;;  %802 = vmatprep.subr.bf16.mxu1 %v1694_v54  ;;  %v1735_v32 = vld [vmem:[#allocation5 + $0xd0] ss:$8 sps:$4 sm:$0xff]   ;;  %s1955_s4 = smov [#allocation10]  }
  0x70   :  { %847 = vmatprep.subr.bf16.mxu0 %v1621_v33  ;;  %v1666_v33 = vld [vmem:[#allocation5 + $0x240] ss:$8 sps:$4 sm:$0xff]   ;;  %v1759_v54 = vld [vmem:[#allocation7 + $0x20] ss:$8 sps:$4 sm:$0xff]   ;;  %s1388_s10 = sshll.u32 %s1955_s4, 4  ;;  %s1389_s10 = int_to_ptr.vmem [resolvable:$true] %s1388_s10 }
  0x71   :  { %v1741_v24 = vld [vmem:[#allocation2 + $0x28] ss:$14 sps:$4 sm:$0x33]   ;;  %s1913_s13 = scalar_lea.vmem %s1389_s10, 64  ;;  %p1918_p5 = scmp.lt.s32.totalorder %s1389_s10, %s1389_s10 }
  0x72   :  { %803 = vmatpush1.bf16.msra.mxu1 %v1699_v57  ;;  %v1704_v57 = vld [vmem:[#allocation5 + $0x2a4] ss:$8 sps:$4 sm:$0xff]   ;;  %v166_v12 = vrot.slane %v1741_v24, %v2060_v18  ;;  %p1914_p4 = scmp.ne.s32.totalorder %s1389_s10, %s1913_s13  ;;  %p1919_p6 = scmp.lt.s32.totalorder %s1913_s13, %s1913_s13 }
  0x73   :  { %848 = vmatpush1.bf16.msra.mxu0 %v1623_v36  ;;  %804 = vmatprep.subr.bf16.mxu1 %v1700_v58  ;;  %v1747_v36 = vld [vmem:[#allocation5 + $0xe0] ss:$8 sps:$4 sm:$0xff]  }
  0x74   :  { %849 = vmatprep.subr.bf16.mxu0 %v1624_v39  ;;  %v1680_v39 = vld [vmem:[#allocation5 + $0x264] ss:$8 sps:$4 sm:$0xff]   ;;  %v1762_v58 = vld [vmem:[#allocation7 + $0x30] ss:$8 sps:$4 sm:$0xff]   ;;  %p1920_p7 = por %p1919_p6, %p1918_p5 }
  0x76   :  { %805 = vmatpush1.bf16.msra.mxu1 %v1705_v62  ;;  %v1765_v62 = vld [vmem:[#allocation7 + $0x40] ss:$8 sps:$4 sm:$0xff]   ;;  %p1921_p8 = pnand %p1920_p7, %p1914_p4 }
  0x77   :  { %850 = vmatpush1.bf16.msra.mxu0 %v1626_v40  ;;  %806 = vmatprep.subr.bf16.mxu1 %v1706_v63  ;;  %v1678_v40 = vld [vmem:[#allocation5 + $0x260] ss:$8 sps:$4 sm:$0xff]   ;;  %v1708_v63 = vld [vmem:[#allocation5 + $0x2b0] ss:$8 sps:$4 sm:$0xff]  }
  0x78   :  { %851 = vmatprep.subr.bf16.mxu0 %v1627_v43  ;;  %v1755_v43 = vld [vmem:[#allocation7 + $0x4] ss:$8 sps:$4 sm:$0xff]  }
  0x7a   :  { %807 = vmatpush1.bf16.msra.mxu1 %v1711_v4  ;;  %v1773_v4 = vld [vmem:[#allocation7 + $0x64] ss:$8 sps:$4 sm:$0xff]  }
  0x7b   :  { %852 = vmatpush1.bf16.msra.mxu0 %v1629_v44  ;;  %808 = vmatprep.subr.bf16.mxu1 %v1712_v5  ;;  %v1686_v44 = vld [vmem:[#allocation5 + $0x274] ss:$8 sps:$4 sm:$0xff]  }
  0x7c   :  { %853 = vmatprep.subr.bf16.mxu0 %v1630_v47  ;;  %v177_v47 = vpack.c.bf16 %v131_v42, %v131_v42  ;;  %v1722_v5 = vld [vmem:[#allocation5 + $0x2d4] ss:$8 sps:$4 sm:$0xff]  }
  0x7d   :  { %v1801_v42 = vld [vmem:[#allocation8 + $0x40] sm:$0xff]  }
  0x7e   :  { %809 = vmatpush1.bf16.msra.mxu1 %v1717_v9  ;;  %v1728_v9 = vld [vmem:[#allocation5 + $0x2e4] ss:$8 sps:$4 sm:$0xff]  }
  0x7f   :  { %854 = vmatpush1.bf16.msra.mxu0 %v1632_v48  ;;  %810 = vmatprep.subr.bf16.mxu1 %v1718_v11  ;;  %v1758_v48 = vld [vmem:[#allocation7 + $0x14] ss:$8 sps:$4 sm:$0xff]   ;;  %v1774_v11 = vld [vmem:[#allocation7 + $0x70] ss:$8 sps:$4 sm:$0xff]  }
  0x80   :  { %855 = vmatprep.subr.bf16.mxu0 %v1633_v51  ;;  %v1690_v51 = vld [vmem:[#allocation5 + $0x280] ss:$8 sps:$4 sm:$0xff]  }
  0x82   :  { %811 = vmatpush1.bf16.msra.mxu1 %v1723_v14  ;;  %v1779_v14 = vld [vmem:[#allocation7 + $0x84] ss:$8 sps:$4 sm:$0xff]  }
  0x83   :  { %856 = vmatpush1.bf16.msra.mxu0 %v1635_v52  ;;  %812 = vmatprep.subr.bf16.mxu1 %v1724_v21  ;;  %v1761_v52 = vld [vmem:[#allocation7 + $0x24] ss:$8 sps:$4 sm:$0xff]   ;;  %v1782_v21 = vld [vmem:[#allocation7 + $0x94] ss:$8 sps:$4 sm:$0xff]  }
  0x84   :  { %857 = vmatprep.subr.bf16.mxu0 %v1636_v55  ;;  %v1696_v55 = vld [vmem:[#allocation5 + $0x290] ss:$8 sps:$4 sm:$0xff]  }
  0x86   :  { %813 = vmatpush1.bf16.msra.mxu1 %v1729_v26  ;;  %v1780_v26 = vld [vmem:[#allocation7 + $0x90] ss:$8 sps:$4 sm:$0xff]  }
  0x87   :  { %858 = vmatpush1.bf16.msra.mxu0 %v1638_v56  ;;  %814 = vmatprep.subr.bf16.mxu1 %v1730_v29  ;;  %v1764_v56 = vld [vmem:[#allocation7 + $0x34] ss:$8 sps:$4 sm:$0xff]   ;;  %v1783_v29 = vld [vmem:[#allocation7 + $0xa0] ss:$8 sps:$4 sm:$0xff]  }
  0x88   :  { %859 = vmatprep.subr.bf16.mxu0 %v1639_v59  ;;  %v1702_v59 = vld [vmem:[#allocation5 + $0x2a0] ss:$8 sps:$4 sm:$0xff]  }
  0x8a   :  { %815 = vmatpush1.bf16.msra.mxu1 %v1735_v32 }
  0x8b   :  { %860 = vmatpush1.bf16.msra.mxu0 %v1641_v60  ;;  %816 = vmatprep.subr.bf16.mxu1 %v1742_v34  ;;  %v1767_v60 = vld [vmem:[#allocation7 + $0x44] ss:$8 sps:$4 sm:$0xff]   ;;  %v1788_v34 = vld [vmem:[#allocation7 + $0xb4] ss:$8 sps:$4 sm:$0xff]  }
  0x8c   :  { %870 = vmatprep.subr.bf16.mxu0 %v1648_v0  ;;  %v1770_v0 = vld [vmem:[#allocation7 + $0x54] ss:$8 sps:$4 sm:$0xff]  }
  0x8e   :  { %862 = vmatmul.mubr.bf16.vlgmr.msra.gmra.mrb[0].mxu0 %v179_v2  ;;  %817 = vmatpush1.bf16.msra.mxu1 %v1747_v36  ;;  %v1768_v2 = vld [vmem:[#allocation7 + $0x50] ss:$8 sps:$4 sm:$0xff]   ;;  %v1789_v36 = vld [vmem:[#allocation7 + $0xc0] ss:$8 sps:$4 sm:$0xff]  }
  0x8f   :  { %871 = vmatpush1.bf16.msra.mxu0 %v1646_v1  ;;  %902 = vmatprep.mubr.bf16.mxu0 %v182_v22  ;;  %v1716_v1 = vld [vmem:[#allocation5 + $0x2c4] ss:$8 sps:$4 sm:$0xff]  }
  0x90   :  { %872 = vmatprep.subr.bf16.mxu0 %v1651_v3  ;;  %818 = vmatprep.subr.bf16.mxu1 %v1748_v38  ;;  %v1714_v3 = vld [vmem:[#allocation5 + $0x2c0] ss:$8 sps:$4 sm:$0xff]   ;;  %v1746_v22 = vld [vmem:[#allocation5 + $0x304] ss:$8 sps:$4 sm:$0xff]   ;;  %v1797_v38 = vld [vmem:[#allocation7 + $0xe4] ss:$8 sps:$4 sm:$0xff]  }
  0x92   :  { %819 = vmatpush1.bf16.msra.mxu1 %v1750_v41  ;;  %v1798_v41 = vld [vmem:[#allocation7 + $0xf0] ss:$8 sps:$4 sm:$0xff]  }
  0x93   :  { %873 = vmatpush1.bf16.msra.mxu0 %v1649_v8  ;;  %1160 = vmatprep.subr.bf16.mxu1 %v1755_v43  ;;  %v1776_v8 = vld [vmem:[#allocation7 + $0x74] ss:$8 sps:$4 sm:$0xff]  }
  0x94   :  { %874 = vmatprep.subr.bf16.mxu0 %v1656_v13  ;;  %v1726_v13 = vld [vmem:[#allocation5 + $0x2e0] ss:$8 sps:$4 sm:$0xff]  }
  0x95   :  { %821 = vmatmul.mubr.bf16.vlgmr.msra.gmra.mrb[0].mxu1 %v177_v47  ;;  %v286_v47 = vsub.s32 0, %v2057_v15 }
  0x96   :  { %1161 = vmatpush1.bf16.msra.mxu1 %v1753_v45 }
  0x97   :  { %875 = vmatpush1.bf16.msra.mxu0 %v1654_v20  ;;  %1162 = vmatprep.subr.bf16.mxu1 %v1758_v48  ;;  %v1732_v20 = vld [vmem:[#allocation5 + $0x2f0] ss:$8 sps:$4 sm:$0xff]   ;;  %v282_v48 = vld [vmem:[%s2111_s2] sm:$0x3] }
  0x98   :  { %876 = vmatprep.subr.bf16.mxu0 %v1662_v23  ;;  %v1738_v23 = vld [vmem:[#allocation2 + $0xc] ss:$14 sps:$4 sm:$0x33]  }
  0x99   :  { %v152_v10 = vrot.slane %v1738_v23, %v2060_v18  ;;  %v1794_v18 = vld [vmem:[#allocation7 + $0xd4] ss:$8 sps:$4 sm:$0xff]  }
  0x9a   :  { %1163 = vmatpush1.bf16.msra.mxu1 %v1756_v50  ;;  %v287_v50 = vrot.slane %v282_v48, %v286_v47 }
  0x9b   :  { %877 = vmatpush1.bf16.msra.mxu0 %v1660_v28  ;;  %1164 = vmatprep.subr.bf16.mxu1 %v1761_v52  ;;  %v1785_v28 = vld [vmem:[#allocation7 + $0xa4] ss:$8 sps:$4 sm:$0xff]   ;;  %v169_v31 = vcombine.low %v152_v10, %v166_v12 }
  0x9c   :  { %878 = vmatprep.subr.bf16.mxu0 %v1668_v30  ;;  %v1954_v30 = vmov 0  }
  0x9d   :  { %v183_v32 = vpack.c.bf16 %v169_v31, %v169_v31 }
  0x9e   :  { %1165 = vmatpush1.bf16.msra.mxu1 %v1759_v54 }
  0x9f   :  { %879 = vmatpush1.bf16.msra.mxu0 %v1666_v33  ;;  %1166 = vmatprep.subr.bf16.mxu1 %v1764_v56  ;;  %v1786_v33 = vld [vmem:[#allocation7 + $0xb0] ss:$8 sps:$4 sm:$0xff]  }
  0xa0   :  { %880 = vmatprep.subr.bf16.mxu0 %v1674_v35  ;;  %v1791_v35 = vld [vmem:[#allocation7 + $0xc4] ss:$8 sps:$4 sm:$0xff]  }
  0xa2   :  { %1167 = vmatpush1.bf16.msra.mxu1 %v1762_v58 }
  0xa3   :  { %881 = vmatpush1.bf16.msra.mxu0 %v1672_v37  ;;  %1168 = vmatprep.subr.bf16.mxu1 %v1767_v60  ;;  %v1792_v37 = vld [vmem:[#allocation7 + $0xd0] ss:$8 sps:$4 sm:$0xff]  }
  0xa4   :  { %882 = vmatprep.subr.bf16.mxu0 %v1680_v39  ;;  %v1795_v39 = vld [vmem:[#allocation7 + $0xe0] ss:$8 sps:$4 sm:$0xff]  }
  0xa6   :  { %1169 = vmatpush1.bf16.msra.mxu1 %v1765_v62 }
  0xa7   :  { %883 = vmatpush1.bf16.msra.mxu0 %v1678_v40  ;;  %1170 = vmatprep.subr.bf16.mxu1 %v1770_v0  ;;  %v1800_v40 = vld [vmem:[#allocation7 + $0xf4] ss:$8 sps:$4 sm:$0xff]  }
  0xa8   :  { %884 = vmatprep.subr.bf16.mxu0 %v1686_v44 }
  0xaa   :  { %1171 = vmatpush1.bf16.msra.mxu1 %v1768_v2  ;;  %v1805_v2 = vld [vmem:[#allocation8 + $0x50] sm:$0xff]  }
  0xab   :  { %885 = vmatpush1.bf16.msra.mxu0 %v1684_v46  ;;  %1172 = vmatprep.subr.bf16.mxu1 %v1773_v4  ;;  %v1807_v4 = vld [vmem:[#allocation8 + $0x58] sm:$0xff]  }
  0xac   :  { %886 = vmatprep.subr.bf16.mxu0 %v1692_v49  ;;  %v290_v49 = vsub.s32 1, %v2057_v15  ;;  %v1804_v15 = vld [vmem:[#allocation8 + $0x8] sm:$0xff]  }
  0xae   :  { %1173 = vmatpush1.bf16.msra.mxu1 %v1771_v6  ;;  %v1809_v6 = vld [vmem:[#allocation8 + $0x60] sm:$0xff]  }
  0xaf   :  { %887 = vmatpush1.bf16.msra.mxu0 %v1690_v51  ;;  %1174 = vmatprep.subr.bf16.mxu1 %v1776_v8  ;;  %v291_v51 = vrot.slane %v282_v48, %v290_v49  ;;  %v1811_v8 = vld [vmem:[#allocation8 + $0x68] sm:$0xff]  }
  0xb0   :  { %888 = vmatprep.subr.bf16.mxu0 %v1698_v53 }
  0xb2   :  { %1175 = vmatpush1.bf16.msra.mxu1 %v1774_v11  ;;  %v1813_v11 = vld [vmem:[#allocation8 + $0x70] sm:$0xff]  }
  0xb3   :  { %889 = vmatpush1.bf16.msra.mxu0 %v1696_v55  ;;  %1176 = vmatprep.subr.bf16.mxu1 %v1779_v14  ;;  %v1815_v14 = vld [vmem:[#allocation8 + $0x78] sm:$0xff]  }
  0xb4   :  { %890 = vmatprep.subr.bf16.mxu0 %v1704_v57 }
  0xb6   :  { %1177 = vmatpush1.bf16.msra.mxu1 %v1777_v19  ;;  %v993_v19 = vrot.slane %v988_v17, %v286_v47 }
  0xb7   :  { %891 = vmatpush1.bf16.msra.mxu0 %v1702_v59  ;;  %1178 = vmatprep.subr.bf16.mxu1 %v1782_v21 }
  0xb8   :  { %892 = vmatprep.subr.bf16.mxu0 %v1710_v61 }
  0xba   :  { %1179 = vmatpush1.bf16.msra.mxu1 %v1780_v26 }
  0xbb   :  { %893 = vmatpush1.bf16.msra.mxu0 %v1708_v63  ;;  %1180 = vmatprep.subr.bf16.mxu1 %v1785_v28  ;;  %v1802_v63 = vld [vmem:[#allocation8] sm:$0xff]  }
  0xbc   :  { %894 = vmatprep.subr.bf16.mxu0 %v1716_v1  ;;  %v1803_v1 = vld [vmem:[#allocation8 + $0x48] sm:$0xff]  }
  0xbe   :  { %1181 = vmatpush1.bf16.msra.mxu1 %v1783_v29 }
  0xbf   :  { %895 = vmatpush1.bf16.msra.mxu0 %v1714_v3  ;;  %1182 = vmatprep.subr.bf16.mxu1 %v1788_v34  ;;  %v1806_v3 = vld [vmem:[#allocation8 + $0x10] sm:$0xff]  }
  0xc0   :  { %896 = vmatprep.subr.bf16.mxu0 %v1722_v5  ;;  %v1808_v5 = vld [vmem:[#allocation8 + $0x18] sm:$0xff]  }
  0xc2   :  { %1183 = vmatpush1.bf16.msra.mxu1 %v1786_v33 }
  0xc3   :  { %897 = vmatpush1.bf16.msra.mxu0 %v1720_v7  ;;  %1184 = vmatprep.subr.bf16.mxu1 %v1791_v35  ;;  %v1810_v7 = vld [vmem:[#allocation8 + $0x20] sm:$0xff]  }
  0xc4   :  { %898 = vmatprep.subr.bf16.mxu0 %v1728_v9  ;;  %v1812_v9 = vld [vmem:[#allocation8 + $0x28] sm:$0xff]  }
  0xc6   :  { %1185 = vmatpush1.bf16.msra.mxu1 %v1789_v36 }
  0xc7   :  { %899 = vmatpush1.bf16.msra.mxu0 %v1726_v13  ;;  %1186 = vmatprep.subr.bf16.mxu1 %v1794_v18  ;;  %v1814_v13 = vld [vmem:[#allocation8 + $0x30] sm:$0xff]  }
  0xc8   :  { %900 = vmatprep.subr.bf16.mxu0 %v1734_v16  ;;  %v1816_v16 = vld [vmem:[#allocation8 + $0x38] sm:$0xff]  }
  0xca   :  { %1187 = vmatpush1.bf16.msra.mxu1 %v1792_v37 }
  0xcb   :  { %901 = vmatpush1.bf16.msra.mxu0 %v1732_v20  ;;  %1188 = vmatprep.subr.bf16.mxu1 %v1797_v38  ;;  %v997_v20 = vrot.slane %v988_v17, %v290_v49 }
  0xcc   :  { %911 = vmatprep.subr.bf16.mxu0 %v1746_v22 }
  0xce   :  { %903 = vmatmul.mubr.bf16.vlgmr.msra.gmra.mrb[0].mxu0 %v181_v25  ;;  %1189 = vmatpush1.bf16.msra.mxu1 %v1795_v39 }
  0xcf   :  { %912 = vmatpush1.bf16.msra.mxu0 %v1744_v27  ;;  %943 = vmatprep.mubr.bf16.mxu0 %v1954_v30  ;;  %v1530_v30 = vld [vmem:[%s2115_s6] ss:$0 sm:$0xff] }
  0xd0   :  { %1190 = vmatprep.subr.bf16.mxu1 %v1800_v40 }
  0xd2   :  { %1191 = vmatpush1.bf16.msra.mxu1 %v1798_v41 }
  0xd3   :  { %1547 = vmatprep.subr.bf16.mxu1 %v1801_v42 }
  0xda   :  { %1497 = vmatmul.mubr.msk.bf16.vlgmr.msra.gmra.mrb[0].mxu0 %vm784_vm0, %v183_v32 }
 0x168   :  { %v822_v43 = vpop.f32.mrb[0].mxu1 }
 0x169   :  { %v824_v44 = vpop.f32.mrb[1].mxu1  ;;  %v823_v52 = vadd.f32 %v822_v43, %v287_v50 }
 0x16a   :  { %v826_v45 = vpop.f32.mrb[2].mxu1  ;;  %v825_v53 = vadd.f32 %v824_v44, %v291_v51 }
 0x16b   :  { %v827_v46 = vpop.f32.mrb[3].mxu1 }
 0x1ad   :  { %v945_v54 = vpop.f32.mrb[0].mxu0 }
 0x1ae   :  { %v1570_v55 = vadd.f32 %v945_v54, %v823_v52  ;;  %v947_v56 = vpop.f32.mrb[1].mxu0 }
 0x1af   :  { %v1572_v57 = vadd.f32 %v947_v56, %v825_v53  ;;  %v949_v58 = vpop.f32.mrb[2].mxu0 }
 0x1b0   :  { %1817 = vtanh.f32 %v1570_v55  ;;  %v950_v59 = vpop.f32.mrb[3].mxu0 }
 0x1b1   :  { %1819 = vtanh.f32 %v1572_v57 }
 0x1ba   :  { %v1818_v60 = vpop.eup %1817 }
 0x1bb   :  { %v1820_v61 = vpop.eup %1819  ;;  %v954_v0 = vpack.c.bf16 %v1818_v60, %v1818_v60 }
 0x1bc   :  { %v955_v62 = vpack.c.bf16 %v1820_v61, %v1820_v61 }
 0x1be   :  { %1192 = vmatprep.mubr.bf16.mxu1 %v955_v62 }
 0x1bf   :  { %1193 = vmatmul.mubr.bf16.vlgmr.msra.gmra.mrb[4].mxu1 %v954_v0 }
 0x1c0   :  { %1548 = vmatpush3.bf16.msra.mxu1 %v1802_v63 }
 0x1c1   :  { %1549 = vmatprep.subr.bf16.mxu1 %v1803_v1 }
 0x1c4   :  { %1550 = vmatpush3.bf16.msra.mxu1 %v1804_v15 }
 0x1c5   :  { %1551 = vmatprep.subr.bf16.mxu1 %v1805_v2 }
 0x1c8   :  { %1552 = vmatpush3.bf16.msra.mxu1 %v1806_v3 }
 0x1c9   :  { %1553 = vmatprep.subr.bf16.mxu1 %v1807_v4 }
 0x1cc   :  { %1554 = vmatpush3.bf16.msra.mxu1 %v1808_v5 }
 0x1cd   :  { %1555 = vmatprep.subr.bf16.mxu1 %v1809_v6 }
 0x1d0   :  { %1556 = vmatpush3.bf16.msra.mxu1 %v1810_v7 }
 0x1d1   :  { %1557 = vmatprep.subr.bf16.mxu1 %v1811_v8 }
 0x1d4   :  { %1558 = vmatpush3.bf16.msra.mxu1 %v1812_v9 }
 0x1d5   :  { %1559 = vmatprep.subr.bf16.mxu1 %v1813_v11 }
 0x1d8   :  { %1560 = vmatpush3.bf16.msra.mxu1 %v1814_v13 }
 0x1d9   :  { %1561 = vmatprep.subr.bf16.mxu1 %v1815_v14 }
 0x1dc   :  { %1562 = vmatpush3.bf16.msra.mxu1 %v1816_v16 }
 0x292   :  { %v1194_v21 = vpop.f32.mrb[4].mxu1 }
 0x293   :  { %v1195_v22 = vadd.f32 %v1194_v21, %v993_v19  ;;  %v1196_v23 = vpop.f32.mrb[5].mxu1 }
 0x294   :  { %v1197_v24 = vadd.f32 %v1196_v23, %v997_v20  ;;  %v1198_v25 = vpop.f32.mrb[6].mxu1 }
 0x295   :  { %1821 = vtanh.f32 %v1195_v22  ;;  %v1199_v26 = vpop.f32.mrb[7].mxu1 }
 0x296   :  { %1823 = vtanh.f32 %v1197_v24 }
 0x29f   :  { %v1822_v27 = vpop.eup %1821 }
 0x2a0   :  { %v1824_v28 = vpop.eup %1823  ;;  %v1203_v12 = vpack.c.bf16 %v1822_v27, %v1822_v27 }
 0x2a1   :  { %v1204_v10 = vpack.c.bf16 %v1824_v28, %v1824_v28 }
 0x2a3   :  { %1372 = vmatprep.mubr.bf16.mxu1 %v1204_v10 }
 0x2a4   :  { %1373 = vmatmul.mubr.bf16.vlgmr.msra.gmra.mrb[8].mxu1 %v1203_v12 }
 0x377   :  { %v1563_v29 = vpop.f32.mrb[8].mxu1 }
 0x378   :  { %v1564_v31 = vpop.f32.mrb[9].mxu1 }
 0x379   :  { %v1565_v32 = vadd.f32 %v1564_v31, %v1563_v29  ;;  %v1566_v33 = vpop.f32.mrb[10].mxu1 }
 0x37a   :  { %v1567_v34 = vpop.f32.mrb[11].mxu1 }
 0x37b   :  { %v1375_v35 = vadd.f32 %v1565_v32, %v1530_v30 }
 0x37d   :  { %v1380_v36 = vpack.c.bf16 %v1375_v35, %v1375_v35 }
 0x37f   :  { %1381 = vst [vmem:[#allocation10] sm:$0xf] %v1380_v36 }
 0x380   :  { %1924 = shalt.err (!%p1921_p8)
}
 0x381   :  { %s1925_s6 = scalar_lea.hbm %s2116_s7, 64 }
 0x382   :  { %p1926_p9 = scmp.ne.s32.totalorder %s2116_s7, %s1925_s6  ;;  %p1929_p10 = scmp.lt.u32.totalorder %s1925_s6, %s2116_s7 }
 0x384   :  { %p1931_p11 = pnand %p1929_p10, %p1926_p9 }
 0x386   :  { %1934 = shalt.err (!%p1931_p11)
}
 0x387   :  { %1391 = dma.vmem_to_hbm [thread:$0]  %s1389_s10, 64, %s2116_s7, [#allocation4]  }
 0x388   :  { %1941 = dma.done.wait [#allocation4], 64  }
 0x389   :  { %1942 = vsyncadd [#allocation4], 4294967232 }
 0x38a   :  { %1395 = vsyncpa [#allocation3], 1 }
 0x38b   :  { %1396 = vsyncpa [#allocation6], 1 }
 0x38c   :  { %1397 = vsyncpa [#allocation9], 1 }
 0x38d   :  { %1398 = vsyncpa [#allocation4], 1 }

</bundles_post_ra>
